<compile_context>
chip_gen: v5e
topology: v5e:2x2
jax: 0.10.0
libtpu: 0.0.40
codegen_flags: <defaults>
</compile_context>

<pallas_src>
import functools

import jax
import jax.numpy as jnp
from jax.experimental import pallas as pl
from jax.experimental.pallas import tpu as pltpu


def _round_up(x, m):
    return ((x + m - 1) // m) * m


def _cdiv(a, b):
    return -(-a // b)


def _addinfo_kernel(feat_ref, w_ref, tab_ref, out_ref, *, cont_lanes, idx_lanes):
    """One fused tile: out = [cont|1|0..] @ W_bd  (+ onehot(idx) @ tab_bd).

    feat_ref : (tn, F) int32.  Lanes [0, cont_lanes) are bitcast-f32 continuous
               values with a per-sub-row constant-1 bias lane; lanes
               [cont_lanes, cont_lanes+idx_lanes) are int32 categorical indices
               with per-column + per-sub-row block offsets already added.
    w_ref    : (cont_lanes, r*D) f32 block-diagonal Linear weights; the bias
               lane row of each block holds the SUM of all continuous biases.
    tab_ref  : (r*k_cat, r*D) f32 block-diagonal concatenated embedding tables.
    """
    feat_i = feat_ref[...]                                # (tn, F) int32
    feat_f = pltpu.bitcast(feat_i, jnp.float32)           # reinterpret, no move

    # Continuous columns + hoisted bias sum: one MXU matmul that already emits
    # the lane-dense folded (tn, r*D) layout.
    acc = jnp.dot(feat_f[:, :cont_lanes], w_ref[...],
                  preferred_element_type=jnp.float32)

    if idx_lanes > 0:
        tn = out_ref.shape[0]
        k_tot = tab_ref.shape[0]                          # r * k_cat
        idx = feat_i[:, cont_lanes:cont_lanes + idx_lanes]
        iota = jax.lax.broadcasted_iota(jnp.int32, (tn, k_tot), 1)
        # All match ranges are disjoint (cumulative offsets), so OR-ing the
        # boolean compares with a single astype is enough (no zeros-init and
        # no per-column float add).
        hit = iota == idx[:, 0:1]
        for i in range(1, idx_lanes):
            hit = hit | (iota == idx[:, i:i + 1])
        acc = acc + jnp.dot(hit.astype(jnp.float32), tab_ref[...],
                            preferred_element_type=jnp.float32)

    out_ref[...] = acc.astype(out_ref.dtype)


def additional_info_forward(x, params, column_list, cnt_list, add_embed_dim,
                            *, tile_n=1024, out_dtype=jnp.bfloat16,
                            fuse_feat_producer=False):
    """x: dict {col: (B, S)}; params: per-column weights.

    Returns (B, S, add_embed_dim) in out_dtype (bf16 default halves the
    dominant HBM writeback stream; pass jnp.float32 for parity tests / v5e).
    """
    cont_cols = [c for c, n in zip(column_list, cnt_list) if n == 1]
    cat_cols = [(c, n) for c, n in zip(column_list, cnt_list) if n > 1]
    n_cont, n_cat = len(cont_cols), len(cat_cols)
    assert n_cont + n_cat > 0, "need at least one column"

    B, S = x[column_list[0]].shape
    N, D = B * S, add_embed_dim

    # Lane-folding factor: fold r consecutive rows into lanes so the output
    # block is 128-lane dense (unmasked vst, dense output DMA).
    r = 128 // D if (0 < D <= 128 and 128 % D == 0) else 1
    d_out = r * D

    # ---- continuous block: values + constant-1 lane (bias folded into matmul)
    f_cont = _round_up(n_cont + 1, 8)
    cont_block = jnp.zeros((N, f_cont), jnp.float32)
    if n_cont:
        cont_vals = jnp.stack(
            [x[c].reshape(N).astype(jnp.float32) for c in cont_cols], axis=1)
        cont_block = cont_block.at[:, :n_cont].set(cont_vals)
    cont_block = cont_block.at[:, n_cont].set(1.0)

    w_aug = jnp.zeros((f_cont, D), jnp.float32)
    if n_cont:
        w = jnp.stack([params[c]["weight"].reshape(D).astype(jnp.float32)
                       for c in cont_cols])
        b_sum = sum(params[c]["bias"].reshape(D).astype(jnp.float32)
                    for c in cont_cols)
        w_aug = w_aug.at[:n_cont].set(w).at[n_cont].set(b_sum)

    # ---- categorical: per-column zero-padded tables + cumulative offsets
    if n_cat:
        pads = [_round_up(cnt, 8) for _, cnt in cat_cols]
        offs, running = [], 0
        for p in pads:
            offs.append(running)
            running += p
        k_cat = running
        idx_cols, tabs = [], []
        for (c, cnt), p, off in zip(cat_cols, pads, offs):
            # Clip: OOB indices would otherwise silently hit padded (zero) rows
            # (the PyTorch module would raise instead).
            idx = jnp.clip(x[c].reshape(N).astype(jnp.int32), 0, cnt - 1)
            idx_cols.append(idx + off)
            tabs.append(jnp.pad(params[c]["weight"].astype(jnp.float32),
                                ((0, p - cnt), (0, 0))))
        cat_idx = jnp.stack(idx_cols, axis=1)                       # (N, n_cat)
        tab_flat = jnp.concatenate(tabs, axis=0)                    # (k_cat, D)
    else:
        k_cat = 8
        cat_idx = None
        tab_flat = jnp.zeros((k_cat, D), jnp.float32)               # dummy

    # ---- fold r consecutive rows into lanes (pure row-major reshapes)
    n_r = _round_up(N, r)
    n_f = n_r // r
    if n_r != N:
        cont_block = jnp.pad(cont_block, ((0, n_r - N), (0, 0)))
        if n_cat:
            cat_idx = jnp.pad(cat_idx, ((0, n_r - N), (0, 0)))
    cont_fold = cont_block.reshape(n_f, r * f_cont)
    cont_lanes = r * f_cont
    if n_cat:
        sub_off = (jnp.arange(r, dtype=jnp.int32) * k_cat)[None, :, None]
        cat_fold = (cat_idx.reshape(n_f, r, n_cat) + sub_off
                    ).reshape(n_f, r * n_cat)
        feat = jnp.concatenate(
            [jax.lax.bitcast_convert_type(cont_fold, jnp.int32), cat_fold],
            axis=1)
        idx_lanes = r * n_cat
    else:
        feat = jax.lax.bitcast_convert_type(cont_fold, jnp.int32)
        idx_lanes = 0

    # Block-diagonal replication so the matmuls directly emit (., r*D) blocks.
    eye_r = jnp.eye(r, dtype=jnp.float32)
    w_bd = jnp.kron(eye_r, w_aug)                                   # (r*f_cont, r*D)
    tab_bd = jnp.kron(eye_r, tab_flat)                              # (r*k_cat, r*D)
    f_lanes = feat.shape[1]

    # ---- row tiling: large balanced tiles, >=2 grid steps for v7x megacore,
    #      explicit VMEM budget incl. one-hot + accumulator (v7x: 64 MiB VMEM).
    row_align = 16                      # sublane multiple valid for f32 & bf16
    lane = 128

    def vmem_bytes(tf):
        est = 4 * (2 * tf * _round_up(f_lanes, lane)       # feat, dbl-buffered
                   + 2 * tf * _round_up(d_out, lane)       # out, dbl-buffered
                   + 2 * w_bd.shape[0] * _round_up(d_out, lane)
                   + 2 * tab_bd.shape[0] * _round_up(d_out, lane)
                   + tf * _round_up(d_out, lane))          # f32 accumulator
        if idx_lanes:
            est += 4 * tf * _round_up(tab_bd.shape[0], lane)   # one-hot
        return est

    tile_f = _round_up(max(1, _cdiv(tile_n, r)), row_align)
    tile_f = min(tile_f, _round_up(n_f, row_align))
    grid_n = _cdiv(n_f, tile_f)
    if n_f >= 2 * row_align:
        grid_n = max(grid_n, 2)                 # keep both v7x TensorCores busy
    tile_f = _round_up(_cdiv(n_f, grid_n), row_align)       # balanced tiles
    while tile_f > row_align and vmem_bytes(tile_f) > 20 * 2**20:
        tile_f = _round_up(tile_f // 2, row_align)
    grid_n = _cdiv(n_f, tile_f)
    n_pad_f = grid_n * tile_f
    if n_pad_f != n_f:
        feat = jnp.pad(feat, ((0, n_pad_f - n_f), (0, 0)))
    vmem_limit = int(min(48 * 2**20, max(16 * 2**20, 2 * vmem_bytes(tile_f))))

    kernel = functools.partial(_addinfo_kernel,
                               cont_lanes=cont_lanes, idx_lanes=idx_lanes)
    out = pl.pallas_call(
        kernel,
        out_shape=jax.ShapeDtypeStruct((n_pad_f, d_out), out_dtype),
        grid_spec=pltpu.PrefetchScalarGridSpec(
            num_scalar_prefetch=0,
            grid=(grid_n,),
            in_specs=[
                pl.BlockSpec((tile_f, f_lanes), lambda i: (i, 0)),
                pl.BlockSpec((w_bd.shape[0], d_out), lambda i: (0, 0)),
                pl.BlockSpec((tab_bd.shape[0], d_out), lambda i: (0, 0)),
            ],
            out_specs=pl.BlockSpec((tile_f, d_out), lambda i: (i, 0)),
        ),
        compiler_params=pltpu.CompilerParams(
            dimension_semantics=("parallel",),
            vmem_limit_bytes=vmem_limit,
            # Opt-in: lets XLA fuse the feat producer into the kernel's input
            # DMA (avoids the extra (N, F) HBM round trip) when this wrapper
            # is jitted together with the upstream column computation.
            allow_input_fusion=([True, False, False]
                                if fuse_feat_producer else None)),
    )(feat, w_bd, tab_bd)

    # Unfold: (n_pad_f, r*D) -> (N, D) -> (B, S, D)  (free row-major reshapes).
    return out[:n_f].reshape(n_f * r, D)[:N].reshape(B, S, D)


def _reference_forward(x, params, column_list, cnt_list, add_embed_dim):
    """Pure-JAX reference mirroring the PyTorch module (stack + sum)."""
    outs = []
    for col, cnt in zip(column_list, cnt_list):
        v = x[col]
        if cnt > 1:
            outs.append(params[col]["weight"][v.astype(jnp.int32)])
        else:
            w = params[col]["weight"].reshape(add_embed_dim)   # (D,)
            b = params[col]["bias"]                            # (D,)
            outs.append(v.astype(jnp.float32)[..., None] * w + b)
    return jnp.sum(jnp.stack(outs, axis=1), axis=1)


if __name__ == "__main__":
    key = jax.random.PRNGKey(0)

    def make_case(key, column_list, cnt_list, D, B, S):
        params, x = {}, {}
        for col, cnt in zip(column_list, cnt_list):
            key, k1, k2, k3 = jax.random.split(key, 4)
            if cnt > 1:
                params[col] = {
                    "weight": jax.random.normal(k1, (cnt, D), jnp.float32)}
                x[col] = jax.random.randint(k3, (B, S), 0, cnt, jnp.int32)
            else:   # nn.Linear(1, D): weight (D, 1), bias (D,)
                params[col] = {
                    "weight": jax.random.normal(k1, (D, 1), jnp.float32),
                    "bias": jax.random.normal(k2, (D,), jnp.float32)}
                x[col] = jax.random.normal(k3, (B, S), jnp.float32)
        return key, x, params

    cases = [
        # (column_list, cnt_list, D, B, S, tile_n)
        (["age", "gender", "region"], [1, 3, 5], 32, 2, 8, 1024),        # r=4
        (["age", "income", "gender", "region"], [1, 1, 7, 13], 32, 3, 50, 256),
        (["age", "income"], [1, 1], 32, 2, 8, 1024),                     # cont only
        (["gender", "region"], [4, 9], 32, 2, 8, 1024),                  # cat only
        (["age", "gender"], [1, 6], 64, 2, 16, 1024),                    # r=2
        (["age", "gender"], [1, 5], 48, 2, 16, 1024),                    # r=1 path
    ]

    # Tolerances: f32 matmuls may be executed via bf16 MXU passes on some TPU
    # generations; structural bugs produce O(1) errors, so these still catch
    # them while tolerating matmul rounding.  bf16 output adds store rounding.
    for column_list, cnt_list, D, B, S, tile_n in cases:
        key, x, params = make_case(key, column_list, cnt_list, D, B, S)
        ref = _reference_forward(x, params, column_list, cnt_list, D)

        out_f32 = additional_info_forward(x, params, column_list, cnt_list, D,
                                          tile_n=tile_n, out_dtype=jnp.float32)
        out_f32 = jax.block_until_ready(out_f32)
        assert out_f32.shape == (B, S, D)
        assert jnp.allclose(out_f32, ref, atol=5e-2, rtol=5e-2), (
            f"f32 mismatch for columns={column_list}, D={D}")

        out_bf16 = additional_info_forward(x, params, column_list, cnt_list, D,
                                           tile_n=tile_n,
                                           out_dtype=jnp.bfloat16)
        out_bf16 = jax.block_until_ready(out_bf16)
        assert out_bf16.shape == (B, S, D)
        assert out_bf16.dtype == jnp.bfloat16
        assert jnp.allclose(out_bf16.astype(jnp.float32), ref,
                            atol=1.5e-1, rtol=1.5e-1), (
            f"bf16 mismatch for columns={column_list}, D={D}")

    print("KERNEL_OK")
</pallas_src>

<mosaic_0001>
module attributes {stable_mosaic.version = 11 : i64} {
  func.func @_addinfo_kernel(%arg0: i32, %arg1: memref<16x40xi32, #tpu.memory_space<vmem>>, %arg2: memref<32x128xf32, #tpu.memory_space<vmem>>, %arg3: memref<64x128xf32, #tpu.memory_space<vmem>>, %arg4: memref<16x128xf32, #tpu.memory_space<vmem>>) attributes {dimension_semantics = [#tpu.dimension_semantics<parallel>], iteration_bounds = array<i64: 1>, scalar_prefetch = 0 : i64, scratch_operands = 0 : i64, tpu.core_type = #tpu.core_type<tc>, window_params = [{transform_indices = @transform_0, window_bounds = array<i64: 16, 40>}, {pipeline_mode = #tpu.pipeline_mode<synchronous>, transform_indices = @transform_1, window_bounds = array<i64: 32, 128>}, {pipeline_mode = #tpu.pipeline_mode<synchronous>, transform_indices = @transform_2, window_bounds = array<i64: 64, 128>}, {transform_indices = @transform_3, window_bounds = array<i64: 16, 128>}]} {
    %c0 = arith.constant 0 : index
    %c0_0 = arith.constant 0 : index
    %0 = vector.load %arg1[%c0, %c0_0] : memref<16x40xi32, #tpu.memory_space<vmem>>, vector<16x40xi32>
    %1 = tpu.bitcast %0 : vector<16x40xi32> -> vector<16x40xf32>
    %2 = vector.extract_strided_slice %1 {offsets = [0, 0], sizes = [16, 32], strides = [1, 1]} : vector<16x40xf32> to vector<16x32xf32>
    %c0_1 = arith.constant 0 : index
    %c0_2 = arith.constant 0 : index
    %3 = vector.load %arg2[%c0_1, %c0_2] : memref<32x128xf32, #tpu.memory_space<vmem>>, vector<32x128xf32>
    %cst = arith.constant dense<0.000000e+00> : vector<16x128xf32>
    %4 = tpu.matmul %2, %3, %cst {dimension_numbers = #tpu.dot_dimension_numbers<[1], [0], [0], [1], [0, 0, 1, 1], [], []>} : vector<16x32xf32>, vector<32x128xf32>, vector<16x128xf32> -> vector<16x128xf32>
    %5 = vector.extract_strided_slice %0 {offsets = [0, 32], sizes = [16, 8], strides = [1, 1]} : vector<16x40xi32> to vector<16x8xi32>
    %6 = tpu.iota {dimensions = array<i32: 1>} : vector<16x64xi32>
    %7 = vector.extract_strided_slice %5 {offsets = [0, 0], sizes = [16, 1], strides = [1, 1]} : vector<16x8xi32> to vector<16x1xi32>
    %8 = vector.broadcast %7 : vector<16x1xi32> to vector<16x64xi32>
    %9 = arith.cmpi eq, %6, %8 : vector<16x64xi32>
    %10 = vector.extract_strided_slice %5 {offsets = [0, 1], sizes = [16, 1], strides = [1, 1]} : vector<16x8xi32> to vector<16x1xi32>
    %11 = vector.broadcast %10 : vector<16x1xi32> to vector<16x64xi32>
    %12 = arith.cmpi eq, %6, %11 : vector<16x64xi32>
    %13 = arith.ori %9, %12 : vector<16x64xi1>
    %14 = vector.extract_strided_slice %5 {offsets = [0, 2], sizes = [16, 1], strides = [1, 1]} : vector<16x8xi32> to vector<16x1xi32>
    %15 = vector.broadcast %14 : vector<16x1xi32> to vector<16x64xi32>
    %16 = arith.cmpi eq, %6, %15 : vector<16x64xi32>
    %17 = arith.ori %13, %16 : vector<16x64xi1>
    %18 = vector.extract_strided_slice %5 {offsets = [0, 3], sizes = [16, 1], strides = [1, 1]} : vector<16x8xi32> to vector<16x1xi32>
    %19 = vector.broadcast %18 : vector<16x1xi32> to vector<16x64xi32>
    %20 = arith.cmpi eq, %6, %19 : vector<16x64xi32>
    %21 = arith.ori %17, %20 : vector<16x64xi1>
    %22 = vector.extract_strided_slice %5 {offsets = [0, 4], sizes = [16, 1], strides = [1, 1]} : vector<16x8xi32> to vector<16x1xi32>
    %23 = vector.broadcast %22 : vector<16x1xi32> to vector<16x64xi32>
    %24 = arith.cmpi eq, %6, %23 : vector<16x64xi32>
    %25 = arith.ori %21, %24 : vector<16x64xi1>
    %26 = vector.extract_strided_slice %5 {offsets = [0, 5], sizes = [16, 1], strides = [1, 1]} : vector<16x8xi32> to vector<16x1xi32>
    %27 = vector.broadcast %26 : vector<16x1xi32> to vector<16x64xi32>
    %28 = arith.cmpi eq, %6, %27 : vector<16x64xi32>
    %29 = arith.ori %25, %28 : vector<16x64xi1>
    %30 = vector.extract_strided_slice %5 {offsets = [0, 6], sizes = [16, 1], strides = [1, 1]} : vector<16x8xi32> to vector<16x1xi32>
    %31 = vector.broadcast %30 : vector<16x1xi32> to vector<16x64xi32>
    %32 = arith.cmpi eq, %6, %31 : vector<16x64xi32>
    %33 = arith.ori %29, %32 : vector<16x64xi1>
    %34 = vector.extract_strided_slice %5 {offsets = [0, 7], sizes = [16, 1], strides = [1, 1]} : vector<16x8xi32> to vector<16x1xi32>
    %35 = vector.broadcast %34 : vector<16x1xi32> to vector<16x64xi32>
    %36 = arith.cmpi eq, %6, %35 : vector<16x64xi32>
    %37 = arith.ori %33, %36 : vector<16x64xi1>
    %38 = arith.extui %37 : vector<16x64xi1> to vector<16x64xi32>
    %39 = arith.sitofp %38 : vector<16x64xi32> to vector<16x64xf32>
    %c0_3 = arith.constant 0 : index
    %c0_4 = arith.constant 0 : index
    %40 = vector.load %arg3[%c0_3, %c0_4] : memref<64x128xf32, #tpu.memory_space<vmem>>, vector<64x128xf32>
    %cst_5 = arith.constant dense<0.000000e+00> : vector<16x128xf32>
    %41 = tpu.matmul %39, %40, %cst_5 {dimension_numbers = #tpu.dot_dimension_numbers<[1], [0], [0], [1], [0, 0, 1, 1], [], []>} : vector<16x64xf32>, vector<64x128xf32>, vector<16x128xf32> -> vector<16x128xf32>
    %42 = arith.addf %4, %41 : vector<16x128xf32>
    %c0_6 = arith.constant 0 : index
    %c0_7 = arith.constant 0 : index
    %43 = vector.load %arg4[%c0_6, %c0_7] : memref<16x128xf32, #tpu.memory_space<vmem>>, vector<16x128xf32>
    tpu.vector_store %arg4[%c0_6, %c0_7], %42 {strides = array<i32>} : memref<16x128xf32, #tpu.memory_space<vmem>>, vector<16x128xf32>,
    return
  }
  func.func @transform_0(%arg0: i32) -> (i32, i32) {
    %c0_i32 = arith.constant 0 : i32
    %c0_i32_0 = arith.constant 0 : i32
    return %arg0, %c0_i32 : i32, i32
  }
  func.func @transform_1(%arg0: i32) -> (i32, i32) {
    %c0_i32 = arith.constant 0 : i32
    %c0_i32_0 = arith.constant 0 : i32
    %c0_i32_1 = arith.constant 0 : i32
    return %c0_i32, %c0_i32_0 : i32, i32
  }
  func.func @transform_2(%arg0: i32) -> (i32, i32) {
    %c0_i32 = arith.constant 0 : i32
    %c0_i32_0 = arith.constant 0 : i32
    %c0_i32_1 = arith.constant 0 : i32
    return %c0_i32, %c0_i32_0 : i32, i32
  }
  func.func @transform_3(%arg0: i32) -> (i32, i32) {
    %c0_i32 = arith.constant 0 : i32
    %c0_i32_0 = arith.constant 0 : i32
    return %arg0, %c0_i32 : i32, i32
  }
}

</mosaic_0001>

<bundles_post_ra>
// kernel: tpu_custom_call.1
= control target key start
LH: loop header
LB: loop body
LE: loop exit
PB: predicated region body
PF: predicated region fallthrough
CT: control target
= control target key end

     0   :  { %8 = vsyncpa [#allocation3], 0  ;;  %s459_s0 = inlined_call_operand.hbm [shape: s32[16,40], index: 0, kind: input, shape index: {}]   ;;  %s460_s1 = inlined_call_operand.hbm [shape: f32[32,128], index: 1, kind: input, shape index: {}]   ;;  %s461_s2 = inlined_call_operand.hbm [shape: f32[64,128], index: 2, kind: input, shape index: {}]   ;;  %s462_s3 = inlined_call_operand.hbm [shape: f32[16,128], index: 3, kind: output, shape index: {}]  }
   0x1   :  { %9 = vsyncpa [#allocation6], 0 }
   0x2   :  { %10 = vsyncpa [#allocation4], 0  ;;  %s28_s14 = sshll.u32 %s460_s1, 4  ;;  %s387_s15 = smov [#allocation5]   ;;  %s29_s14 = int_to_ptr.hbm [resolvable:$true] %s28_s14 }
   0x3   :  { %s30_s16 = sshll.u32 %s387_s15, 4  ;;  %s15_s19 = sshll.u32 %s459_s0, 4  ;;  %s31_s16 = int_to_ptr.vmem [resolvable:$true] %s30_s16  ;;  %s16_s19 = int_to_ptr.hbm [resolvable:$true] %s15_s19 }
   0x4   :  { %s388_s20 = smov 128   ;;  %s389_s21 = smov 8  }
   0x5   :  { %36 = dma.hbm_to_vmem [thread:$0]  %s29_s14, 512, %s31_s16, [#allocation6], %s388_s20, %s388_s20, %s389_s21  }
   0x6   :  { %s390_s22 = smov [#allocation2]   ;;  %s41_s1 = sshll.u32 %s461_s2, 4  ;;  %s42_s1 = int_to_ptr.hbm [resolvable:$true] %s41_s1 }
   0x7   :  { %s17_s23 = sshll.u32 %s390_s22, 4  ;;  %s391_s0 = smov [#allocation7]   ;;  %s18_s23 = int_to_ptr.vmem [resolvable:$true] %s17_s23 }
   0x8   :  { %23 = dma.hbm_to_vmem [thread:$0]  %s16_s19, 256, %s18_s23, [#allocation3], %s388_s20, %s388_s20, %s389_s21  }
   0x9   :  { %s43_s26 = sshll.u32 %s391_s0, 4  ;;  %s44_s26 = int_to_ptr.vmem [resolvable:$true] %s43_s26 }
   0xa   :  { %49 = dma.hbm_to_vmem [thread:$0]  %s42_s1, 1024, %s44_s26, [#allocation6], %s388_s20, %s388_s20, %s389_s21  }
   0xb   :  { %381 = dma.done.wait [#allocation3], 256  }
   0xc   :  { %382 = vsyncadd [#allocation3], 4294967040 }
   0xd   :  { %383 = dma.done.wait [#allocation6], 1536  }
   0xe   :  { %384 = vsyncadd [#allocation6], 4294965760  ;;  %v392_v0 = vmov 34   ;;  %v393_v1 = vmov 32   ;;  %v394_v2 = vmov 36   ;;  %v440_v3 = vld [vmem:[#allocation2 + $0x8] sm:$0xff]  ;;  %v68_v26 = vlaneseq }
   0xf   :  { %271 = vset.pattern.permute.xlu1 %v392_v0  ;;  %269 = vset.pattern.permute.xlu0 %v393_v1  ;;  %v395_v4 = vmov 35   ;;  %v396_v5 = vmov 33   ;;  %v397_v6 = vmov 37   ;;  %v62_v7 = vld [vmem:[#allocation2] sm:$0xff]  ;;  %v398_v8 = vmov 38   ;;  %v159_v10 = vld [vmem:[#allocation7 + $0x38] sm:$0xff] }
  0x10   :  { %273 = vset.pattern.permute.xlu2 %v394_v2  ;;  %92 = vperm.xlu1 %271, %v440_v3   ;;  %v399_v9 = vmov 39   ;;  %v158_v11 = vld [vmem:[#allocation7 + $0x30] sm:$0xff]  ;;  %v157_v12 = vld [vmem:[#allocation7 + $0x28] sm:$0xff]  ;;  %v156_v13 = vld [vmem:[#allocation7 + $0x20] sm:$0xff]  ;;  %vm190_vm0 = vcmask 261120   ;;  %v69_v29 = vand.u32 127, %v68_v26 }
  0x11   :  { %74 = vperm.xlu0 %269, %v440_v3   ;;  %112 = vperm.xlu2 %273, %v440_v3   ;;  %v67_v14 = vld [vmem:[#allocation5 + $0x18] sm:$0xff]  ;;  %v66_v16 = vld [vmem:[#allocation5 + $0x10] sm:$0xff]  ;;  %v65_v18 = vld [vmem:[#allocation5 + $0x8] sm:$0xff]  ;;  %vm160_vm15 = vcmask 523264   ;;  %v400_v35 = vmov 0.0   ;;  %s401_s2 = smov [#allocation8]  }
  0x12   :  { %246 = vmatpush.msra.mxu2 %v159_v10  ;;  %175 = vmatpush.msra.mxu0 %v159_v10  ;;  %v155_v15 = vld [vmem:[#allocation7 + $0x18] sm:$0xff]  ;;  %v154_v17 = vld [vmem:[#allocation7 + $0x10] sm:$0xff]  ;;  %v153_v20 = vld [vmem:[#allocation7 + $0x8] sm:$0xff]  ;;  %s224_s27 = sshll.u32 %s401_s2, 4  ;;  %s226_s30 = sshll.u32 %s462_s3, 4  ;;  %s225_s27 = int_to_ptr.vmem [resolvable:$true] %s224_s27  ;;  %s227_s30 = int_to_ptr.hbm [resolvable:$true] %s226_s30 }
  0x13   :  { %207 = vmatpush.msra.mxu1 %v67_v14  ;;  %v64_v21 = vld [vmem:[#allocation5] sm:$0xff] }
  0x14   :  { %247 = vmatpush.msra.mxu2 %v158_v11  ;;  %176 = vmatpush.msra.mxu0 %v158_v11  ;;  %v152_v22 = vld [vmem:[#allocation7] sm:$0xff] }
  0x15   :  { %208 = vmatpush.msra.mxu1 %v66_v16 }
  0x16   :  { %248 = vmatpush.msra.mxu2 %v157_v12  ;;  %177 = vmatpush.msra.mxu0 %v157_v12 }
  0x17   :  { %209 = vmatpush.msra.mxu1 %v65_v18 }
  0x18   :  { %272 = vset.pattern.permute.xlu1 %v395_v4  ;;  %249 = vmatpush.msra.mxu2 %v156_v13 }
  0x19   :  { %270 = vset.pattern.permute.xlu0 %v396_v5  ;;  %102 = vperm.xlu1 %272, %v440_v3  }
  0x1a   :  { %82 = vperm.xlu0 %270, %v440_v3   ;;  %274 = vset.pattern.permute.xlu2 %v397_v6 }
  0x1b   :  { %122 = vperm.xlu2 %274, %v440_v3   ;;  %178 = vmatpush.msra.mxu0 %v156_v13 }
  0x1c   :  { %250 = vmatpush.msra.mxu2 %v155_v15  ;;  %210 = vmatpush.msra.mxu1 %v64_v21 }
  0x1d   :  { %179 = vmatpush.msra.mxu0 %v155_v15  ;;  %244 = vmatmul.msk.f32.vlgmr.msra.gmra.mxu1 %vm190_vm0, %v62_v7 }
  0x1e   :  { %251 = vmatpush.msra.mxu2 %v154_v17 }
  0x1f   :  { %180 = vmatpush.msra.mxu0 %v154_v17 }
  0x20   :  { %252 = vmatpush.msra.mxu2 %v153_v20 }
  0x21   :  { %275 = vset.pattern.permute.xlu1 %v398_v8  ;;  %181 = vmatpush.msra.mxu0 %v153_v20 }
  0x22   :  { %79 = vperm.xlu0 %270, %v62_v7   ;;  %132 = vperm.xlu1 %275, %v440_v3  }
  0x23   :  { %276 = vset.pattern.permute.xlu2 %v393_v1  ;;  %253 = vmatpush.msra.mxu2 %v152_v22 }
  0x24   :  { %71 = vperm.xlu2 %276, %v62_v7   ;;  %182 = vmatpush.msra.mxu0 %v152_v22 }
  0x25   :  { %245 = vmatmul.msk.f32.gmra.mxu1 %vm190_vm0, %v440_v3 }
  0x2a   :  { %279 = vset.pattern.permute.xlu0 %v395_v4  ;;  %277 = vset.pattern.permute.xlu1 %v399_v9 }
  0x2b   :  { %99 = vperm.xlu0 %279, %v62_v7   ;;  %142 = vperm.xlu1 %277, %v440_v3  }
  0x2c   :  { %278 = vset.pattern.permute.xlu2 %v392_v0 }
  0x2d   :  { %89 = vperm.xlu2 %278, %v62_v7  }
  0x33   :  { %284 = vset.pattern.permute.xlu0 %v399_v9  ;;  %280 = vset.pattern.permute.xlu1 %v394_v2 }
  0x34   :  { %109 = vperm.xlu1 %280, %v62_v7  }
  0x35   :  { %281 = vset.pattern.permute.xlu2 %v397_v6 }
  0x36   :  { %119 = vperm.xlu2 %281, %v62_v7  }
  0x3c   :  { %282 = vset.pattern.permute.xlu1 %v398_v8 }
  0x3d   :  { %129 = vperm.xlu1 %282, %v62_v7  }
  0x3e   :  { %283 = vset.pattern.permute.xlu2 %v399_v9 }
  0x3f   :  { %139 = vperm.xlu2 %283, %v62_v7  }
  0x6b   :  { %v113_v19 = vpop.permute.xlu2 %112 }
  0x6c   :  { %vm115_vm8 = vcmp.eq.s32.totalorder %v69_v29, %v113_v19 }
  0x75   :  { %v123_v25 = vpop.permute.xlu2 %122 }
  0x76   :  { %vm125_vm11 = vcmp.eq.s32.totalorder %v69_v29, %v123_v25 }
  0x7e   :  { %v72_v30 = vpop.permute.xlu2 %71 }
  0x82   :  { %v93_v23 = vpop.permute.xlu1 %92 }
  0x83   :  { %v75_v24 = vpop.permute.xlu0 %74  ;;  %vm95_vm4 = vcmp.eq.s32.totalorder %v69_v29, %v93_v23 }
  0x84   :  { %vm77_vm1 = vcmp.eq.s32.totalorder %v69_v29, %v75_v24 }
  0x87   :  { %v90_v32 = vpop.permute.xlu2 %89 }
  0x8b   :  { %v103_v27 = vpop.permute.xlu1 %102 }
  0x8c   :  { %v83_v28 = vpop.permute.xlu0 %82  ;;  %vm105_vm6 = vcmp.eq.s32.totalorder %v69_v29, %v103_v27 }
  0x8d   :  { %vm85_vm2 = vcmp.eq.s32.totalorder %v69_v29, %v83_v28 }
  0x8e   :  { %vm87_vm3 = vmor %vm77_vm1, %vm85_vm2  ;;  %vm76_vm1 = vcmp.eq.s32.totalorder %v69_v29, %v72_v30 }
  0x8f   :  { %vm97_vm5 = vmor %vm87_vm3, %vm95_vm4  ;;  %vm94_vm4 = vcmp.eq.s32.totalorder %v69_v29, %v90_v32 }
  0x90   :  { %vm107_vm7 = vmor %vm97_vm5, %vm105_vm6  ;;  %v120_v37 = vpop.permute.xlu2 %119 }
  0x91   :  { %vm117_vm9 = vmor %vm107_vm7, %vm115_vm8 }
  0x92   :  { %vm127_vm12 = vmor %vm117_vm9, %vm125_vm11 }
  0x94   :  { %v133_v31 = vpop.permute.xlu1 %132  ;;  %v80_v33 = vpop.permute.xlu0 %79 }
  0x95   :  { %vm135_vm10 = vcmp.eq.s32.totalorder %v69_v29, %v133_v31  ;;  %vm84_vm2 = vcmp.eq.s32.totalorder %v69_v29, %v80_v33 }
  0x96   :  { %vm137_vm13 = vmor %vm127_vm12, %vm135_vm10  ;;  %vm124_vm10 = vcmp.eq.s32.totalorder %v69_v29, %v120_v37 }
  0x97   :  { %vm86_vm3 = vmor %vm76_vm1, %vm84_vm2 }
  0x98   :  { %vm96_vm7 = vmor %vm86_vm3, %vm94_vm4 }
  0x99   :  { %v140_v40 = vpop.permute.xlu2 %139 }
  0x9a   :  { %vm144_vm11 = vcmp.eq.s32.totalorder %v69_v29, %v140_v40  ;;  %v212_v43 = vpop.f32.mrf.mxu1 }
  0x9d   :  { %v143_v34 = vpop.permute.xlu1 %142  ;;  %v100_v38 = vpop.permute.xlu0 %99 }
  0x9e   :  { %vm145_vm14 = vcmp.eq.s32.totalorder %v69_v29, %v143_v34  ;;  %vm104_vm5 = vcmp.eq.s32.totalorder %v69_v29, %v100_v38 }
  0x9f   :  { %vm147_vm0 = vmor %vm137_vm13, %vm145_vm14 }
  0xa0   :  { %v241_v36 = vsel %vm147_vm0, 1.0, %v400_v35  ;;  %vm106_vm8 = vmor %vm96_vm7, %vm104_vm5 }
  0xa1   :  { %243 = vmatmul.msk.f32.vlgmr.msra.gmra.mxu2 %vm160_vm15, %v241_v36 }
  0xa2   :  { %v215_v44 = vpop.f32.mrf.mxu1 }
  0xa6   :  { %v110_v39 = vpop.permute.xlu1 %109 }
  0xa7   :  { %vm114_vm6 = vcmp.eq.s32.totalorder %v69_v29, %v110_v39 }
  0xa8   :  { %vm116_vm9 = vmor %vm106_vm8, %vm114_vm6 }
  0xa9   :  { %vm126_vm12 = vmor %vm116_vm9, %vm124_vm10 }
  0xaf   :  { %v130_v41 = vpop.permute.xlu1 %129 }
  0xb0   :  { %vm134_vm13 = vcmp.eq.s32.totalorder %v69_v29, %v130_v41 }
  0xb1   :  { %vm136_vm14 = vmor %vm126_vm12, %vm134_vm13 }
  0xb2   :  { %vm146_vm0 = vmor %vm136_vm14, %vm144_vm11 }
  0xb3   :  { %v240_v42 = vsel %vm146_vm0, 1.0, %v400_v35 }
  0xb4   :  { %242 = vmatmul.msk.f32.vlgmr.msra.gmra.mxu0 %vm160_vm15, %v240_v42 }
 0x124   :  { %v187_v45 = vpop.f32.mrf.mxu2 }
 0x125   :  { %v216_v46 = vadd.f32 %v215_v44, %v187_v45 }
 0x127   :  { %219 = vst [vmem:[#allocation8 + $0x8] sm:$0xff] %v216_v46 }
 0x131   :  { %v184_v47 = vpop.f32.mrf.mxu0 }
 0x132   :  { %v213_v48 = vadd.f32 %v212_v43, %v184_v47 }
 0x134   :  { %218 = vst [vmem:[#allocation8] sm:$0xff] %v213_v48 }
 0x135   :  { %232 = dma.vmem_to_hbm [thread:$0]  %s225_s27, 256, %s227_s30, [#allocation4], %s388_s20, %s388_s20, %s389_s21  }
 0x136   :  { %385 = dma.done.wait [#allocation4], 256  }
 0x137   :  { %386 = vsyncadd [#allocation4], 4294967040 }
 0x138   :  { %237 = vsyncpa [#allocation3], 1 }
 0x139   :  { %238 = vsyncpa [#allocation6], 1 }
 0x13a   :  { %239 = vsyncpa [#allocation4], 1 }

</bundles_post_ra>
